<compile_context>
chip_gen: v7x
topology: tpu7x:2x2x1
jax: 0.10.0
libtpu: 0.0.40
codegen_flags: <defaults>
</compile_context>

<pallas_src>
import functools

import jax
import jax.numpy as jnp
from jax import lax
from jax.experimental import pallas as pl
from jax.experimental.pallas import tpu as pltpu


def _round_up(x, m):
    return ((x + m - 1) // m) * m


def _estimate_vmem_limit(T, BB, E, H, G):
    """Explicit scoped-VMEM budget (review: v5e default is only 16 MiB)."""
    bf16, f32 = 2, 4
    stream = 2 * (T * BB * E * bf16 + T * BB * H * bf16)        # double-buffered x in / h_seq out
    consts = 2 * ((E * G + H * G + G + 2 * BB * H) * f32)       # W_ih, W_hh, b, h0, c0 blocks
    finals = 2 * (2 * BB * H * f32)                             # h_n / c_n blocks
    scratch = (T * BB * G + T * BB * H + 2 * BB * H) * f32      # gates + h staging + state
    est = stream + consts + finals + scratch
    return int(min(max(4 * est, 8 << 20), 48 << 20))            # stay under v7x's 64 MiB physical


def _lstm_recurrence_kernel(x_ref, w_ih_ref, w_hh_ref, b_ref, h0_ref, c0_ref,
                            h_seq_ref, h_fin_ref, c_fin_ref,
                            gx_sc, hbuf_sc, h_sc, c_sc,
                            *, seq_len, needs_guard, unroll):
    """One (batch-block, time-chunk) grid step of the LSTM.

    x_ref      : (T, BB, E) bf16   embedded chars for this chunk (streamed)
    w_ih_ref   : (E, 4H)    f32    input-to-hidden weights ([i|f|o|g] column order)
    w_hh_ref   : (H, 4H)    f32    hidden-to-hidden weights ([i|f|o|g] column order)
    b_ref      : (1, 4H)    f32    fused bias (bias_ih + bias_hh)
    h0/c0_ref  : (BB, H)    f32    initial state for this batch block
    h_seq_ref  : (T, BB, H) bf16   per-timestep hidden state (vocab projection done outside)
    h_fin/c_fin: (BB, H)    f32    final state, written once on the last time chunk
    gx_sc      : (T*BB, 4H) f32    per-chunk gates scratch (fused x @ W_ih + b)
    hbuf_sc    : (T, BB, H) f32    per-chunk hidden-state staging buffer
    h_sc/c_sc  : (BB, H)    f32    recurrent state, resident across time chunks
    """
    tchunk = pl.program_id(1)                  # time axis is the last (recurrent) grid axis
    last_t = pl.num_programs(1) - 1
    T, BB, E = x_ref.shape
    H = h_sc.shape[-1]

    # ---- Parallel per-chunk work: fused input projection on the MXU (off the serial path) ----
    xv = x_ref[...].astype(jnp.float32).reshape(T * BB, E)
    gx_sc[...] = (jnp.dot(xv, w_ih_ref[...], preferred_element_type=jnp.float32)
                  + b_ref[...])

    @pl.when(tchunk == 0)
    def _():
        h_sc[...] = h0_ref[...]
        c_sc[...] = c0_ref[...]

    # Read the resident state and weights ONCE per chunk; the recurrence runs on vreg carries.
    w_hh = w_hh_ref[...]
    h_in = h_sc[...]
    c_in = c_sc[...]
    base = tchunk * T

    def run_chunk(guard):
        def step(i, carry):
            h_prev, c_prev = carry
            off = pl.multiple_of(i * BB, BB)
            # Only the hidden-to-hidden matmul is on the serial critical path.
            # TODO(synk): hold W_hh staged on the MXU (matmul_push_rhs/acc_lhs/pop) across the chunk.
            gates = (gx_sc[pl.ds(off, BB), :]
                     + jnp.dot(h_prev, w_hh, preferred_element_type=jnp.float32))   # (BB, 4H)
            # Gate order is [i|f|o|g]: one sigmoid over a contiguous 3H slab + one tanh over H.
            sig = jax.nn.sigmoid(gates[:, : 3 * H])
            i_g = sig[:, 0 * H:1 * H]
            f_g = sig[:, 1 * H:2 * H]
            o_g = sig[:, 2 * H:3 * H]
            g_g = jnp.tanh(gates[:, 3 * H:])
            c_new = f_g * c_prev + i_g * g_g
            h_new = o_g * jnp.tanh(c_new)
            if guard:  # emitted only for the last time chunk when L was padded
                valid = (base + i) < seq_len
                c_new = jnp.where(valid, c_new, c_prev)
                h_new = jnp.where(valid, h_new, h_prev)
            hbuf_sc[i] = h_new          # f32 staging store; bf16 stream-out happens once per chunk
            return (h_new, c_new)

        return lax.fori_loop(0, T, step, (h_in, c_in), unroll=unroll)

    if needs_guard:
        @pl.when(tchunk != last_t)
        def _():
            h, c = run_chunk(False)
            h_sc[...] = h
            c_sc[...] = c

        @pl.when(tchunk == last_t)
        def _():
            h, c = run_chunk(True)
            h_sc[...] = h
            c_sc[...] = c
            h_fin_ref[...] = h
            c_fin_ref[...] = c
    else:
        h, c = run_chunk(False)
        h_sc[...] = h
        c_sc[...] = c

        @pl.when(tchunk == last_t)
        def _():
            h_fin_ref[...] = h
            c_fin_ref[...] = c

    # Whole-block bf16 stream-out of this chunk's hidden states (single wide store per chunk).
    h_seq_ref[...] = hbuf_sc[...].astype(h_seq_ref.dtype)


def char_decoder_forward(input_ids, params, dec_hidden=None, *, time_chunk=32, batch_chunk=None):
    """Pallas implementation of CharDecoder.forward.

    input_ids : (L, B) int32 character ids
    params    : dict of weights (see init_params)
    dec_hidden: optional (h0, c0), each (1, B, H)

    Returns (scores, (h_n, c_n)) with scores (L, B, V), h_n/c_n (1, B, H).
    """
    L, B = input_ids.shape
    E = params["emb"].shape[1]
    H = params["w_hh"].shape[0]
    V = params["w_proj"].shape[1]
    G = 4 * H

    # --- One-time gate reorder [i|f|g|o] -> [i|f|o|g] so sigmoid covers a contiguous 3H slab ---
    perm = jnp.concatenate([jnp.arange(0, 2 * H), jnp.arange(3 * H, 4 * H),
                            jnp.arange(2 * H, 3 * H)])
    w_ih = params["w_ih"][:, perm].astype(jnp.float32)
    w_hh = params["w_hh"][:, perm].astype(jnp.float32)
    b_g = params["b"][perm].reshape(1, G).astype(jnp.float32)

    # --- Embedding gather (parallel XLA); stream embedded chars to the kernel in bf16 ---
    x = jnp.take(params["emb"].astype(jnp.bfloat16), input_ids, axis=0)       # (L, B, E)

    # Pad E so the fused in-kernel contraction is nicely aligned (zero columns contribute nothing).
    E_pad = _round_up(E, 64)
    if E_pad != E:
        x = jnp.pad(x, ((0, 0), (0, 0), (0, E_pad - E)))
        w_ih = jnp.pad(w_ih, ((0, E_pad - E), (0, 0)))

    # --- Batch padding / batch blocks (multiple of 8; multiple of 16 when split, for bf16) ---
    if batch_chunk is None:
        B_pad = _round_up(max(B, 8), 8)
        BB = B_pad
    else:
        BB = _round_up(max(batch_chunk, 16), 16)
        B_pad = _round_up(max(B, BB), BB)
    n_b = B_pad // BB

    # --- Time chunking ---
    T = max(1, min(time_chunk, L))
    n_t = -(-L // T)
    L_pad = n_t * T
    needs_guard = (L_pad != L)

    if (L_pad, B_pad) != (L, B):
        x = jnp.pad(x, ((0, L_pad - L), (0, B_pad - B), (0, 0)))

    if dec_hidden is None:
        h0 = jnp.zeros((B_pad, H), jnp.float32)
        c0 = jnp.zeros((B_pad, H), jnp.float32)
    else:
        h0 = dec_hidden[0].reshape(B, H).astype(jnp.float32)
        c0 = dec_hidden[1].reshape(B, H).astype(jnp.float32)
        if B_pad != B:
            h0 = jnp.pad(h0, ((0, B_pad - B), (0, 0)))
            c0 = jnp.pad(c0, ((0, B_pad - B), (0, 0)))

    unroll = True if BB * G <= 4096 else min(8, T)     # cap unroll when gate tiles get large
    vmem_limit = _estimate_vmem_limit(T, BB, E_pad, H, G)

    kernel = functools.partial(_lstm_recurrence_kernel, seq_len=L,
                               needs_guard=needs_guard, unroll=unroll)

    h_seq, h_n, c_n = pl.pallas_call(
        kernel,
        out_shape=(
            jax.ShapeDtypeStruct((L_pad, B_pad, H), jnp.bfloat16),   # per-step hidden (bf16 stream)
            jax.ShapeDtypeStruct((B_pad, H), jnp.float32),           # final h
            jax.ShapeDtypeStruct((B_pad, H), jnp.float32),           # final c
        ),
        grid_spec=pltpu.PrefetchScalarGridSpec(
            num_scalar_prefetch=0,
            grid=(n_b, n_t),                                         # recurrent (time) axis last
            in_specs=[
                pl.BlockSpec((T, BB, E_pad), lambda b, t: (t, b, 0)),   # x chunk (bf16)
                pl.BlockSpec((E_pad, G), lambda b, t: (0, 0)),          # W_ih (constant block)
                pl.BlockSpec((H, G), lambda b, t: (0, 0)),              # W_hh (constant block)
                pl.BlockSpec((1, G), lambda b, t: (0, 0)),              # fused bias
                pl.BlockSpec((BB, H), lambda b, t: (b, 0)),             # h0
                pl.BlockSpec((BB, H), lambda b, t: (b, 0)),             # c0
            ],
            out_specs=[
                pl.BlockSpec((T, BB, H), lambda b, t: (t, b, 0)),       # h_seq chunk (bf16)
                pl.BlockSpec((BB, H), lambda b, t: (b, 0)),             # h_n
                pl.BlockSpec((BB, H), lambda b, t: (b, 0)),             # c_n
            ],
            scratch_shapes=[
                pltpu.VMEM((T * BB, G), jnp.float32),    # per-chunk gates (fused x @ W_ih + b)
                pltpu.VMEM((T, BB, H), jnp.float32),     # per-chunk hidden-state staging
                pltpu.VMEM((BB, H), jnp.float32),        # resident recurrent h
                pltpu.VMEM((BB, H), jnp.float32),        # resident recurrent c
            ],
        ),
        compiler_params=pltpu.CompilerParams(
            dimension_semantics=("parallel", "arbitrary"),   # batch blocks parallel (v7x 2 TCs)
            vmem_limit_bytes=vmem_limit,
        ),
    )(x, w_ih, w_hh, b_g, h0, c0)

    h_seq = h_seq[:L, :B]                                              # drop time/batch padding

    # --- Hoisted, parallel vocab projection over all timesteps at once (bf16 h on the MXU) ---
    scores = (h_seq.reshape(L * B, H) @ params["w_proj"]
              + params["b_proj"]).reshape(L, B, V)

    return scores, (h_n[:B].reshape(1, B, H), c_n[:B].reshape(1, B, H))


def init_params(key, char_vocab_size, char_embedding_size, hidden_size):
    """Deterministic synthetic parameters, matching nn.LSTM / nn.Linear / nn.Embedding shapes."""
    ks = jax.random.split(key, 7)
    E, H, V = char_embedding_size, hidden_size, char_vocab_size
    scale = 0.1
    return {
        "emb":    scale * jax.random.normal(ks[0], (V, E), jnp.float32),
        # PyTorch stores weight_ih as (4H, E); pre-transposed for right-matmul. Gate order [i|f|g|o].
        "w_ih":   scale * jax.random.normal(ks[1], (E, 4 * H), jnp.float32),
        "w_hh":   scale * jax.random.normal(ks[2], (H, 4 * H), jnp.float32),
        # bias_ih + bias_hh folded into a single bias.
        "b":      scale * jax.random.normal(ks[3], (4 * H,), jnp.float32),
        "w_proj": scale * jax.random.normal(ks[4], (H, V), jnp.float32),
        "b_proj": scale * jax.random.normal(ks[5], (V,), jnp.float32),
    }


def _reference_forward(input_ids, params, dec_hidden):
    """Pure-JAX f32 reference (lax.scan) for numerical sanity check."""
    H = params["w_hh"].shape[0]
    x = jnp.take(params["emb"], input_ids, axis=0).astype(jnp.float32)
    h0, c0 = dec_hidden[0][0], dec_hidden[1][0]

    def step(carry, x_t):
        h, c = carry
        gates = x_t @ params["w_ih"] + h @ params["w_hh"] + params["b"]
        i = jax.nn.sigmoid(gates[:, :H])
        f = jax.nn.sigmoid(gates[:, H:2 * H])
        g = jnp.tanh(gates[:, 2 * H:3 * H])
        o = jax.nn.sigmoid(gates[:, 3 * H:])
        c = f * c + i * g
        h = o * jnp.tanh(c)
        s = h @ params["w_proj"] + params["b_proj"]
        return (h, c), s

    (h_n, c_n), s = jax.lax.scan(step, (h0, c0), x)
    return s, (h_n[None], c_n[None])


if __name__ == "__main__":
    L, B = 9, 4            # (length, batch) -- L=9 with time_chunk=4 exercises the tail guard
    E, H, V = 50, 32, 30   # char_embedding_size, hidden_size, char vocab size

    key = jax.random.PRNGKey(0)
    k_par, k_in, k_h, k_c = jax.random.split(key, 4)

    params = init_params(k_par, char_vocab_size=V, char_embedding_size=E, hidden_size=H)
    input_ids = jax.random.randint(k_in, (L, B), 0, V, dtype=jnp.int32)
    dec_hidden = (0.1 * jax.random.normal(k_h, (1, B, H), jnp.float32),
                  0.1 * jax.random.normal(k_c, (1, B, H), jnp.float32))

    # time_chunk=4 -> grid=(1, 3): exercises chunk-0 init, cross-chunk resident state,
    # the last-chunk-only padding guard, and the single finalize write.
    fwd = jax.jit(functools.partial(char_decoder_forward, params=params, time_chunk=4))
    scores, (h_n, c_n) = fwd(input_ids, dec_hidden=dec_hidden)
    jax.block_until_ready((scores, h_n, c_n))

    # Numerical sanity check against the pure-JAX f32 scan reference (bf16 streaming => looser tol).
    s_ref, (h_ref, c_ref) = _reference_forward(input_ids, params, dec_hidden)
    assert scores.shape == (L, B, V) and h_n.shape == (1, B, H) and c_n.shape == (1, B, H)
    assert jnp.allclose(scores, s_ref, rtol=5e-2, atol=5e-3)
    assert jnp.allclose(h_n, h_ref, rtol=5e-2, atol=5e-3)
    assert jnp.allclose(c_n, c_ref, rtol=5e-2, atol=5e-3)

    print("KERNEL_OK")
</pallas_src>

<mosaic_0001>
module attributes {stable_mosaic.version = 11 : i64} {
  func.func @_lstm_recurrence_kernel(%arg0: i32, %arg1: i32, %arg2: memref<4x8x64xbf16, #tpu.memory_space<vmem>>, %arg3: memref<64x128xf32, #tpu.memory_space<vmem>>, %arg4: memref<32x128xf32, #tpu.memory_space<vmem>>, %arg5: memref<1x128xf32, #tpu.memory_space<vmem>>, %arg6: memref<8x32xf32, #tpu.memory_space<vmem>>, %arg7: memref<8x32xf32, #tpu.memory_space<vmem>>, %arg8: memref<4x8x32xbf16, #tpu.memory_space<vmem>>, %arg9: memref<8x32xf32, #tpu.memory_space<vmem>>, %arg10: memref<8x32xf32, #tpu.memory_space<vmem>>, %arg11: memref<32x128xf32, #tpu.memory_space<vmem>>, %arg12: memref<4x8x32xf32, #tpu.memory_space<vmem>>, %arg13: memref<8x32xf32, #tpu.memory_space<vmem>>, %arg14: memref<8x32xf32, #tpu.memory_space<vmem>>) attributes {dimension_semantics = [#tpu.dimension_semantics<parallel>, #tpu.dimension_semantics<arbitrary>], iteration_bounds = array<i64: 1, 3>, scalar_prefetch = 0 : i64, scratch_operands = 4 : i64, tpu.core_type = #tpu.core_type<tc>, window_params = [{transform_indices = @transform_0, window_bounds = array<i64: 4, 8, 64>}, {pipeline_mode = #tpu.pipeline_mode<synchronous>, transform_indices = @transform_1, window_bounds = array<i64: 64, 128>}, {pipeline_mode = #tpu.pipeline_mode<synchronous>, transform_indices = @transform_2, window_bounds = array<i64: 32, 128>}, {pipeline_mode = #tpu.pipeline_mode<synchronous>, transform_indices = @transform_3, window_bounds = array<i64: 1, 128>}, {transform_indices = @transform_4, window_bounds = array<i64: 8, 32>}, {transform_indices = @transform_5, window_bounds = array<i64: 8, 32>}, {transform_indices = @transform_6, window_bounds = array<i64: 4, 8, 32>}, {transform_indices = @transform_7, window_bounds = array<i64: 8, 32>}, {transform_indices = @transform_8, window_bounds = array<i64: 8, 32>}]} {
    %c0 = arith.constant 0 : index
    %c0_0 = arith.constant 0 : index
    %c0_1 = arith.constant 0 : index
    %0 = vector.load %arg2[%c0, %c0_0, %c0_1] : memref<4x8x64xbf16, #tpu.memory_space<vmem>>, vector<4x8x64xbf16>
    %1 = arith.extf %0 : vector<4x8x64xbf16> to vector<4x8x64xf32>
    %2 = vector.shape_cast %1 : vector<4x8x64xf32> to vector<32x64xf32>
    %c0_2 = arith.constant 0 : index
    %c0_3 = arith.constant 0 : index
    %3 = vector.load %arg3[%c0_2, %c0_3] : memref<64x128xf32, #tpu.memory_space<vmem>>, vector<64x128xf32>
    %cst = arith.constant dense<0.000000e+00> : vector<32x128xf32>
    %4 = tpu.matmul %2, %3, %cst {dimension_numbers = #tpu.dot_dimension_numbers<[1], [0], [0], [1], [0, 0, 1, 1], [], []>} : vector<32x64xf32>, vector<64x128xf32>, vector<32x128xf32> -> vector<32x128xf32>
    %c0_4 = arith.constant 0 : index
    %c0_5 = arith.constant 0 : index
    %5 = vector.load %arg5[%c0_4, %c0_5] : memref<1x128xf32, #tpu.memory_space<vmem>>, vector<1x128xf32>
    %6 = vector.broadcast %5 : vector<1x128xf32> to vector<32x128xf32>
    %7 = arith.addf %4, %6 : vector<32x128xf32>
    %c0_6 = arith.constant 0 : index
    %c0_7 = arith.constant 0 : index
    %8 = vector.load %arg11[%c0_6, %c0_7] : memref<32x128xf32, #tpu.memory_space<vmem>>, vector<32x128xf32>
    tpu.vector_store %arg11[%c0_6, %c0_7], %7 {strides = array<i32>} : memref<32x128xf32, #tpu.memory_space<vmem>>, vector<32x128xf32>,
    %c0_i32 = arith.constant 0 : i32
    %9 = arith.cmpi eq, %arg1, %c0_i32 : i32
    %10 = arith.extui %9 : i1 to i32
    %c0_i32_8 = arith.constant 0 : i32
    %11 = arith.cmpi ne, %10, %c0_i32_8 : i32
    scf.if %11 {
      %c0_24 = arith.constant 0 : index
      %c0_25 = arith.constant 0 : index
      %25 = vector.load %arg6[%c0_24, %c0_25] : memref<8x32xf32, #tpu.memory_space<vmem>>, vector<8x32xf32>
      %c0_26 = arith.constant 0 : index
      %c0_27 = arith.constant 0 : index
      %26 = vector.load %arg13[%c0_26, %c0_27] : memref<8x32xf32, #tpu.memory_space<vmem>>, vector<8x32xf32>
      tpu.vector_store %arg13[%c0_26, %c0_27], %25 {strides = array<i32>} : memref<8x32xf32, #tpu.memory_space<vmem>>, vector<8x32xf32>,
      %c0_28 = arith.constant 0 : index
      %c0_29 = arith.constant 0 : index
      %27 = vector.load %arg7[%c0_28, %c0_29] : memref<8x32xf32, #tpu.memory_space<vmem>>, vector<8x32xf32>
      %c0_30 = arith.constant 0 : index
      %c0_31 = arith.constant 0 : index
      %28 = vector.load %arg14[%c0_30, %c0_31] : memref<8x32xf32, #tpu.memory_space<vmem>>, vector<8x32xf32>
      tpu.vector_store %arg14[%c0_30, %c0_31], %27 {strides = array<i32>} : memref<8x32xf32, #tpu.memory_space<vmem>>, vector<8x32xf32>,
    } else {
    }
    %c0_9 = arith.constant 0 : index
    %c0_10 = arith.constant 0 : index
    %12 = vector.load %arg4[%c0_9, %c0_10] : memref<32x128xf32, #tpu.memory_space<vmem>>, vector<32x128xf32>
    %c0_11 = arith.constant 0 : index
    %c0_12 = arith.constant 0 : index
    %13 = vector.load %arg13[%c0_11, %c0_12] : memref<8x32xf32, #tpu.memory_space<vmem>>, vector<8x32xf32>
    %c0_13 = arith.constant 0 : index
    %c0_14 = arith.constant 0 : index
    %14 = vector.load %arg14[%c0_13, %c0_14] : memref<8x32xf32, #tpu.memory_space<vmem>>, vector<8x32xf32>
    %c4_i32 = arith.constant 4 : i32
    %15 = arith.muli %arg1, %c4_i32 : i32
    %c2_i32 = arith.constant 2 : i32
    %16 = arith.cmpi ne, %arg1, %c2_i32 : i32
    %17 = arith.extui %16 : i1 to i32
    %c0_i32_15 = arith.constant 0 : i32
    %18 = arith.cmpi ne, %17, %c0_i32_15 : i32
    scf.if %18 {
      %c0_i32_24 = arith.constant 0 : i32
      %c8_i32 = arith.constant 8 : i32
      %25 = arith.muli %c0_i32_24, %c8_i32 : i32
      %26 = tpu.assume_multiple %25, 8 : i32
      %27 = arith.index_cast %26 : i32 to index
      %c0_25 = arith.constant 0 : index
      %28 = vector.load %arg11[%27, %c0_25] : memref<32x128xf32, #tpu.memory_space<vmem>>, vector<8x128xf32>
      %cst_26 = arith.constant dense<0.000000e+00> : vector<8x128xf32>
      %29 = tpu.matmul %13, %12, %cst_26 {dimension_numbers = #tpu.dot_dimension_numbers<[1], [0], [0], [1], [0, 0, 1, 1], [], []>} : vector<8x32xf32>, vector<32x128xf32>, vector<8x128xf32> -> vector<8x128xf32>
      %30 = arith.addf %28, %29 : vector<8x128xf32>
      %31 = vector.extract_strided_slice %30 {offsets = [0, 0], sizes = [8, 96], strides = [1, 1]} : vector<8x128xf32> to vector<8x96xf32>
      %32 = arith.negf %31 : vector<8x96xf32>
      %33 = math.exp %32 : vector<8x96xf32>
      %cst_27 = arith.constant 1.000000e+00 : f32
      %34 = vector.broadcast %cst_27 : f32 to vector<8x96xf32>
      %35 = arith.addf %34, %33 : vector<8x96xf32>
      %36 = arith.divf %34, %35 : vector<8x96xf32>
      %37 = vector.extract_strided_slice %36 {offsets = [0, 0], sizes = [8, 32], strides = [1, 1]} : vector<8x96xf32> to vector<8x32xf32>
      %38 = vector.extract_strided_slice %36 {offsets = [0, 32], sizes = [8, 32], strides = [1, 1]} : vector<8x96xf32> to vector<8x32xf32>
      %39 = vector.extract_strided_slice %36 {offsets = [0, 64], sizes = [8, 32], strides = [1, 1]} : vector<8x96xf32> to vector<8x32xf32>
      %40 = vector.extract_strided_slice %30 {offsets = [0, 96], sizes = [8, 32], strides = [1, 1]} : vector<8x128xf32> to vector<8x32xf32>
      %41 = math.tanh %40 : vector<8x32xf32>
      %42 = arith.mulf %38, %14 : vector<8x32xf32>
      %43 = arith.mulf %37, %41 : vector<8x32xf32>
      %44 = arith.addf %42, %43 : vector<8x32xf32>
      %45 = math.tanh %44 : vector<8x32xf32>
      %46 = arith.mulf %39, %45 : vector<8x32xf32>
      %47 = arith.index_cast %c0_i32_24 : i32 to index
      %c0_28 = arith.constant 0 : index
      %c0_29 = arith.constant 0 : index
      %48 = vector.load %arg12[%47, %c0_28, %c0_29] : memref<4x8x32xf32, #tpu.memory_space<vmem>>, vector<1x8x32xf32>
      %49 = vector.shape_cast %48 : vector<1x8x32xf32> to vector<8x32xf32>
      %50 = vector.shape_cast %46 : vector<8x32xf32> to vector<1x8x32xf32>
      tpu.vector_store %arg12[%47, %c0_28, %c0_29], %50 {strides = array<i32>} : memref<4x8x32xf32, #tpu.memory_space<vmem>>, vector<1x8x32xf32>,
      %c1_i32 = arith.constant 1 : i32
      %c8_i32_30 = arith.constant 8 : i32
      %51 = arith.muli %c1_i32, %c8_i32_30 : i32
      %52 = tpu.assume_multiple %51, 8 : i32
      %53 = arith.index_cast %52 : i32 to index
      %c0_31 = arith.constant 0 : index
      %54 = vector.load %arg11[%53, %c0_31] : memref<32x128xf32, #tpu.memory_space<vmem>>, vector<8x128xf32>
      %cst_32 = arith.constant dense<0.000000e+00> : vector<8x128xf32>
      %55 = tpu.matmul %46, %12, %cst_32 {dimension_numbers = #tpu.dot_dimension_numbers<[1], [0], [0], [1], [0, 0, 1, 1], [], []>} : vector<8x32xf32>, vector<32x128xf32>, vector<8x128xf32> -> vector<8x128xf32>
      %56 = arith.addf %54, %55 : vector<8x128xf32>
      %57 = vector.extract_strided_slice %56 {offsets = [0, 0], sizes = [8, 96], strides = [1, 1]} : vector<8x128xf32> to vector<8x96xf32>
      %58 = arith.negf %57 : vector<8x96xf32>
      %59 = math.exp %58 : vector<8x96xf32>
      %cst_33 = arith.constant 1.000000e+00 : f32
      %60 = vector.broadcast %cst_33 : f32 to vector<8x96xf32>
      %61 = arith.addf %60, %59 : vector<8x96xf32>
      %62 = arith.divf %60, %61 : vector<8x96xf32>
      %63 = vector.extract_strided_slice %62 {offsets = [0, 0], sizes = [8, 32], strides = [1, 1]} : vector<8x96xf32> to vector<8x32xf32>
      %64 = vector.extract_strided_slice %62 {offsets = [0, 32], sizes = [8, 32], strides = [1, 1]} : vector<8x96xf32> to vector<8x32xf32>
      %65 = vector.extract_strided_slice %62 {offsets = [0, 64], sizes = [8, 32], strides = [1, 1]} : vector<8x96xf32> to vector<8x32xf32>
      %66 = vector.extract_strided_slice %56 {offsets = [0, 96], sizes = [8, 32], strides = [1, 1]} : vector<8x128xf32> to vector<8x32xf32>
      %67 = math.tanh %66 : vector<8x32xf32>
      %68 = arith.mulf %64, %44 : vector<8x32xf32>
      %69 = arith.mulf %63, %67 : vector<8x32xf32>
      %70 = arith.addf %68, %69 : vector<8x32xf32>
      %71 = math.tanh %70 : vector<8x32xf32>
      %72 = arith.mulf %65, %71 : vector<8x32xf32>
      %73 = arith.index_cast %c1_i32 : i32 to index
      %c0_34 = arith.constant 0 : index
      %c0_35 = arith.constant 0 : index
      %74 = vector.load %arg12[%73, %c0_34, %c0_35] : memref<4x8x32xf32, #tpu.memory_space<vmem>>, vector<1x8x32xf32>
      %75 = vector.shape_cast %74 : vector<1x8x32xf32> to vector<8x32xf32>
      %76 = vector.shape_cast %72 : vector<8x32xf32> to vector<1x8x32xf32>
      tpu.vector_store %arg12[%73, %c0_34, %c0_35], %76 {strides = array<i32>} : memref<4x8x32xf32, #tpu.memory_space<vmem>>, vector<1x8x32xf32>,
      %c2_i32_36 = arith.constant 2 : i32
      %c8_i32_37 = arith.constant 8 : i32
      %77 = arith.muli %c2_i32_36, %c8_i32_37 : i32
      %78 = tpu.assume_multiple %77, 8 : i32
      %79 = arith.index_cast %78 : i32 to index
      %c0_38 = arith.constant 0 : index
      %80 = vector.load %arg11[%79, %c0_38] : memref<32x128xf32, #tpu.memory_space<vmem>>, vector<8x128xf32>
      %cst_39 = arith.constant dense<0.000000e+00> : vector<8x128xf32>
      %81 = tpu.matmul %72, %12, %cst_39 {dimension_numbers = #tpu.dot_dimension_numbers<[1], [0], [0], [1], [0, 0, 1, 1], [], []>} : vector<8x32xf32>, vector<32x128xf32>, vector<8x128xf32> -> vector<8x128xf32>
      %82 = arith.addf %80, %81 : vector<8x128xf32>
      %83 = vector.extract_strided_slice %82 {offsets = [0, 0], sizes = [8, 96], strides = [1, 1]} : vector<8x128xf32> to vector<8x96xf32>
      %84 = arith.negf %83 : vector<8x96xf32>
      %85 = math.exp %84 : vector<8x96xf32>
      %cst_40 = arith.constant 1.000000e+00 : f32
      %86 = vector.broadcast %cst_40 : f32 to vector<8x96xf32>
      %87 = arith.addf %86, %85 : vector<8x96xf32>
      %88 = arith.divf %86, %87 : vector<8x96xf32>
      %89 = vector.extract_strided_slice %88 {offsets = [0, 0], sizes = [8, 32], strides = [1, 1]} : vector<8x96xf32> to vector<8x32xf32>
      %90 = vector.extract_strided_slice %88 {offsets = [0, 32], sizes = [8, 32], strides = [1, 1]} : vector<8x96xf32> to vector<8x32xf32>
      %91 = vector.extract_strided_slice %88 {offsets = [0, 64], sizes = [8, 32], strides = [1, 1]} : vector<8x96xf32> to vector<8x32xf32>
      %92 = vector.extract_strided_slice %82 {offsets = [0, 96], sizes = [8, 32], strides = [1, 1]} : vector<8x128xf32> to vector<8x32xf32>
      %93 = math.tanh %92 : vector<8x32xf32>
      %94 = arith.mulf %90, %70 : vector<8x32xf32>
      %95 = arith.mulf %89, %93 : vector<8x32xf32>
      %96 = arith.addf %94, %95 : vector<8x32xf32>
      %97 = math.tanh %96 : vector<8x32xf32>
      %98 = arith.mulf %91, %97 : vector<8x32xf32>
      %99 = arith.index_cast %c2_i32_36 : i32 to index
      %c0_41 = arith.constant 0 : index
      %c0_42 = arith.constant 0 : index
      %100 = vector.load %arg12[%99, %c0_41, %c0_42] : memref<4x8x32xf32, #tpu.memory_space<vmem>>, vector<1x8x32xf32>
      %101 = vector.shape_cast %100 : vector<1x8x32xf32> to vector<8x32xf32>
      %102 = vector.shape_cast %98 : vector<8x32xf32> to vector<1x8x32xf32>
      tpu.vector_store %arg12[%99, %c0_41, %c0_42], %102 {strides = array<i32>} : memref<4x8x32xf32, #tpu.memory_space<vmem>>, vector<1x8x32xf32>,
      %c3_i32 = arith.constant 3 : i32
      %c8_i32_43 = arith.constant 8 : i32
      %103 = arith.muli %c3_i32, %c8_i32_43 : i32
      %104 = tpu.assume_multiple %103, 8 : i32
      %105 = arith.index_cast %104 : i32 to index
      %c0_44 = arith.constant 0 : index
      %106 = vector.load %arg11[%105, %c0_44] : memref<32x128xf32, #tpu.memory_space<vmem>>, vector<8x128xf32>
      %cst_45 = arith.constant dense<0.000000e+00> : vector<8x128xf32>
      %107 = tpu.matmul %98, %12, %cst_45 {dimension_numbers = #tpu.dot_dimension_numbers<[1], [0], [0], [1], [0, 0, 1, 1], [], []>} : vector<8x32xf32>, vector<32x128xf32>, vector<8x128xf32> -> vector<8x128xf32>
      %108 = arith.addf %106, %107 : vector<8x128xf32>
      %109 = vector.extract_strided_slice %108 {offsets = [0, 0], sizes = [8, 96], strides = [1, 1]} : vector<8x128xf32> to vector<8x96xf32>
      %110 = arith.negf %109 : vector<8x96xf32>
      %111 = math.exp %110 : vector<8x96xf32>
      %cst_46 = arith.constant 1.000000e+00 : f32
      %112 = vector.broadcast %cst_46 : f32 to vector<8x96xf32>
      %113 = arith.addf %112, %111 : vector<8x96xf32>
      %114 = arith.divf %112, %113 : vector<8x96xf32>
      %115 = vector.extract_strided_slice %114 {offsets = [0, 0], sizes = [8, 32], strides = [1, 1]} : vector<8x96xf32> to vector<8x32xf32>
      %116 = vector.extract_strided_slice %114 {offsets = [0, 32], sizes = [8, 32], strides = [1, 1]} : vector<8x96xf32> to vector<8x32xf32>
      %117 = vector.extract_strided_slice %114 {offsets = [0, 64], sizes = [8, 32], strides = [1, 1]} : vector<8x96xf32> to vector<8x32xf32>
      %118 = vector.extract_strided_slice %108 {offsets = [0, 96], sizes = [8, 32], strides = [1, 1]} : vector<8x128xf32> to vector<8x32xf32>
      %119 = math.tanh %118 : vector<8x32xf32>
      %120 = arith.mulf %116, %96 : vector<8x32xf32>
      %121 = arith.mulf %115, %119 : vector<8x32xf32>
      %122 = arith.addf %120, %121 : vector<8x32xf32>
      %123 = math.tanh %122 : vector<8x32xf32>
      %124 = arith.mulf %117, %123 : vector<8x32xf32>
      %125 = arith.index_cast %c3_i32 : i32 to index
      %c0_47 = arith.constant 0 : index
      %c0_48 = arith.constant 0 : index
      %126 = vector.load %arg12[%125, %c0_47, %c0_48] : memref<4x8x32xf32, #tpu.memory_space<vmem>>, vector<1x8x32xf32>
      %127 = vector.shape_cast %126 : vector<1x8x32xf32> to vector<8x32xf32>
      %128 = vector.shape_cast %124 : vector<8x32xf32> to vector<1x8x32xf32>
      tpu.vector_store %arg12[%125, %c0_47, %c0_48], %128 {strides = array<i32>} : memref<4x8x32xf32, #tpu.memory_space<vmem>>, vector<1x8x32xf32>,
      %c4_i32_49 = arith.constant 4 : i32
      %c0_50 = arith.constant 0 : index
      %c0_51 = arith.constant 0 : index
      %129 = vector.load %arg13[%c0_50, %c0_51] : memref<8x32xf32, #tpu.memory_space<vmem>>, vector<8x32xf32>
      tpu.vector_store %arg13[%c0_50, %c0_51], %124 {strides = array<i32>} : memref<8x32xf32, #tpu.memory_space<vmem>>, vector<8x32xf32>,
      %c0_52 = arith.constant 0 : index
      %c0_53 = arith.constant 0 : index
      %130 = vector.load %arg14[%c0_52, %c0_53] : memref<8x32xf32, #tpu.memory_space<vmem>>, vector<8x32xf32>
      tpu.vector_store %arg14[%c0_52, %c0_53], %122 {strides = array<i32>} : memref<8x32xf32, #tpu.memory_space<vmem>>, vector<8x32xf32>,
    } else {
    }
    %c2_i32_16 = arith.constant 2 : i32
    %19 = arith.cmpi eq, %arg1, %c2_i32_16 : i32
    %20 = arith.extui %19 : i1 to i32
    %c0_i32_17 = arith.constant 0 : i32
    %21 = arith.cmpi ne, %20, %c0_i32_17 : i32
    scf.if %21 {
      %c0_i32_24 = arith.constant 0 : i32
      %c8_i32 = arith.constant 8 : i32
      %25 = arith.muli %c0_i32_24, %c8_i32 : i32
      %26 = tpu.assume_multiple %25, 8 : i32
      %27 = arith.index_cast %26 : i32 to index
      %c0_25 = arith.constant 0 : index
      %28 = vector.load %arg11[%27, %c0_25] : memref<32x128xf32, #tpu.memory_space<vmem>>, vector<8x128xf32>
      %cst_26 = arith.constant dense<0.000000e+00> : vector<8x128xf32>
      %29 = tpu.matmul %13, %12, %cst_26 {dimension_numbers = #tpu.dot_dimension_numbers<[1], [0], [0], [1], [0, 0, 1, 1], [], []>} : vector<8x32xf32>, vector<32x128xf32>, vector<8x128xf32> -> vector<8x128xf32>
      %30 = arith.addf %28, %29 : vector<8x128xf32>
      %31 = vector.extract_strided_slice %30 {offsets = [0, 0], sizes = [8, 96], strides = [1, 1]} : vector<8x128xf32> to vector<8x96xf32>
      %32 = arith.negf %31 : vector<8x96xf32>
      %33 = math.exp %32 : vector<8x96xf32>
      %cst_27 = arith.constant 1.000000e+00 : f32
      %34 = vector.broadcast %cst_27 : f32 to vector<8x96xf32>
      %35 = arith.addf %34, %33 : vector<8x96xf32>
      %36 = arith.divf %34, %35 : vector<8x96xf32>
      %37 = vector.extract_strided_slice %36 {offsets = [0, 0], sizes = [8, 32], strides = [1, 1]} : vector<8x96xf32> to vector<8x32xf32>
      %38 = vector.extract_strided_slice %36 {offsets = [0, 32], sizes = [8, 32], strides = [1, 1]} : vector<8x96xf32> to vector<8x32xf32>
      %39 = vector.extract_strided_slice %36 {offsets = [0, 64], sizes = [8, 32], strides = [1, 1]} : vector<8x96xf32> to vector<8x32xf32>
      %40 = vector.extract_strided_slice %30 {offsets = [0, 96], sizes = [8, 32], strides = [1, 1]} : vector<8x128xf32> to vector<8x32xf32>
      %41 = math.tanh %40 : vector<8x32xf32>
      %42 = arith.mulf %38, %14 : vector<8x32xf32>
      %43 = arith.mulf %37, %41 : vector<8x32xf32>
      %44 = arith.addf %42, %43 : vector<8x32xf32>
      %45 = math.tanh %44 : vector<8x32xf32>
      %46 = arith.mulf %39, %45 : vector<8x32xf32>
      %47 = arith.addi %15, %c0_i32_24 : i32
      %c9_i32 = arith.constant 9 : i32
      %48 = arith.cmpi slt, %47, %c9_i32 : i32
      %49 = arith.select %48, %44, %14 : vector<8x32xf32>
      %50 = arith.select %48, %46, %13 : vector<8x32xf32>
      %51 = arith.index_cast %c0_i32_24 : i32 to index
      %c0_28 = arith.constant 0 : index
      %c0_29 = arith.constant 0 : index
      %52 = vector.load %arg12[%51, %c0_28, %c0_29] : memref<4x8x32xf32, #tpu.memory_space<vmem>>, vector<1x8x32xf32>
      %53 = vector.shape_cast %52 : vector<1x8x32xf32> to vector<8x32xf32>
      %54 = vector.shape_cast %50 : vector<8x32xf32> to vector<1x8x32xf32>
      tpu.vector_store %arg12[%51, %c0_28, %c0_29], %54 {strides = array<i32>} : memref<4x8x32xf32, #tpu.memory_space<vmem>>, vector<1x8x32xf32>,
      %c1_i32 = arith.constant 1 : i32
      %c8_i32_30 = arith.constant 8 : i32
      %55 = arith.muli %c1_i32, %c8_i32_30 : i32
      %56 = tpu.assume_multiple %55, 8 : i32
      %57 = arith.index_cast %56 : i32 to index
      %c0_31 = arith.constant 0 : index
      %58 = vector.load %arg11[%57, %c0_31] : memref<32x128xf32, #tpu.memory_space<vmem>>, vector<8x128xf32>
      %cst_32 = arith.constant dense<0.000000e+00> : vector<8x128xf32>
      %59 = tpu.matmul %50, %12, %cst_32 {dimension_numbers = #tpu.dot_dimension_numbers<[1], [0], [0], [1], [0, 0, 1, 1], [], []>} : vector<8x32xf32>, vector<32x128xf32>, vector<8x128xf32> -> vector<8x128xf32>
      %60 = arith.addf %58, %59 : vector<8x128xf32>
      %61 = vector.extract_strided_slice %60 {offsets = [0, 0], sizes = [8, 96], strides = [1, 1]} : vector<8x128xf32> to vector<8x96xf32>
      %62 = arith.negf %61 : vector<8x96xf32>
      %63 = math.exp %62 : vector<8x96xf32>
      %cst_33 = arith.constant 1.000000e+00 : f32
      %64 = vector.broadcast %cst_33 : f32 to vector<8x96xf32>
      %65 = arith.addf %64, %63 : vector<8x96xf32>
      %66 = arith.divf %64, %65 : vector<8x96xf32>
      %67 = vector.extract_strided_slice %66 {offsets = [0, 0], sizes = [8, 32], strides = [1, 1]} : vector<8x96xf32> to vector<8x32xf32>
      %68 = vector.extract_strided_slice %66 {offsets = [0, 32], sizes = [8, 32], strides = [1, 1]} : vector<8x96xf32> to vector<8x32xf32>
      %69 = vector.extract_strided_slice %66 {offsets = [0, 64], sizes = [8, 32], strides = [1, 1]} : vector<8x96xf32> to vector<8x32xf32>
      %70 = vector.extract_strided_slice %60 {offsets = [0, 96], sizes = [8, 32], strides = [1, 1]} : vector<8x128xf32> to vector<8x32xf32>
      %71 = math.tanh %70 : vector<8x32xf32>
      %72 = arith.mulf %68, %49 : vector<8x32xf32>
      %73 = arith.mulf %67, %71 : vector<8x32xf32>
      %74 = arith.addf %72, %73 : vector<8x32xf32>
      %75 = math.tanh %74 : vector<8x32xf32>
      %76 = arith.mulf %69, %75 : vector<8x32xf32>
      %77 = arith.addi %15, %c1_i32 : i32
      %c9_i32_34 = arith.constant 9 : i32
      %78 = arith.cmpi slt, %77, %c9_i32_34 : i32
      %79 = arith.select %78, %74, %49 : vector<8x32xf32>
      %80 = arith.select %78, %76, %50 : vector<8x32xf32>
      %81 = arith.index_cast %c1_i32 : i32 to index
      %c0_35 = arith.constant 0 : index
      %c0_36 = arith.constant 0 : index
      %82 = vector.load %arg12[%81, %c0_35, %c0_36] : memref<4x8x32xf32, #tpu.memory_space<vmem>>, vector<1x8x32xf32>
      %83 = vector.shape_cast %82 : vector<1x8x32xf32> to vector<8x32xf32>
      %84 = vector.shape_cast %80 : vector<8x32xf32> to vector<1x8x32xf32>
      tpu.vector_store %arg12[%81, %c0_35, %c0_36], %84 {strides = array<i32>} : memref<4x8x32xf32, #tpu.memory_space<vmem>>, vector<1x8x32xf32>,
      %c2_i32_37 = arith.constant 2 : i32
      %c8_i32_38 = arith.constant 8 : i32
      %85 = arith.muli %c2_i32_37, %c8_i32_38 : i32
      %86 = tpu.assume_multiple %85, 8 : i32
      %87 = arith.index_cast %86 : i32 to index
      %c0_39 = arith.constant 0 : index
      %88 = vector.load %arg11[%87, %c0_39] : memref<32x128xf32, #tpu.memory_space<vmem>>, vector<8x128xf32>
      %cst_40 = arith.constant dense<0.000000e+00> : vector<8x128xf32>
      %89 = tpu.matmul %80, %12, %cst_40 {dimension_numbers = #tpu.dot_dimension_numbers<[1], [0], [0], [1], [0, 0, 1, 1], [], []>} : vector<8x32xf32>, vector<32x128xf32>, vector<8x128xf32> -> vector<8x128xf32>
      %90 = arith.addf %88, %89 : vector<8x128xf32>
      %91 = vector.extract_strided_slice %90 {offsets = [0, 0], sizes = [8, 96], strides = [1, 1]} : vector<8x128xf32> to vector<8x96xf32>
      %92 = arith.negf %91 : vector<8x96xf32>
      %93 = math.exp %92 : vector<8x96xf32>
      %cst_41 = arith.constant 1.000000e+00 : f32
      %94 = vector.broadcast %cst_41 : f32 to vector<8x96xf32>
      %95 = arith.addf %94, %93 : vector<8x96xf32>
      %96 = arith.divf %94, %95 : vector<8x96xf32>
      %97 = vector.extract_strided_slice %96 {offsets = [0, 0], sizes = [8, 32], strides = [1, 1]} : vector<8x96xf32> to vector<8x32xf32>
      %98 = vector.extract_strided_slice %96 {offsets = [0, 32], sizes = [8, 32], strides = [1, 1]} : vector<8x96xf32> to vector<8x32xf32>
      %99 = vector.extract_strided_slice %96 {offsets = [0, 64], sizes = [8, 32], strides = [1, 1]} : vector<8x96xf32> to vector<8x32xf32>
      %100 = vector.extract_strided_slice %90 {offsets = [0, 96], sizes = [8, 32], strides = [1, 1]} : vector<8x128xf32> to vector<8x32xf32>
      %101 = math.tanh %100 : vector<8x32xf32>
      %102 = arith.mulf %98, %79 : vector<8x32xf32>
      %103 = arith.mulf %97, %101 : vector<8x32xf32>
      %104 = arith.addf %102, %103 : vector<8x32xf32>
      %105 = math.tanh %104 : vector<8x32xf32>
      %106 = arith.mulf %99, %105 : vector<8x32xf32>
      %107 = arith.addi %15, %c2_i32_37 : i32
      %c9_i32_42 = arith.constant 9 : i32
      %108 = arith.cmpi slt, %107, %c9_i32_42 : i32
      %109 = arith.select %108, %104, %79 : vector<8x32xf32>
      %110 = arith.select %108, %106, %80 : vector<8x32xf32>
      %111 = arith.index_cast %c2_i32_37 : i32 to index
      %c0_43 = arith.constant 0 : index
      %c0_44 = arith.constant 0 : index
      %112 = vector.load %arg12[%111, %c0_43, %c0_44] : memref<4x8x32xf32, #tpu.memory_space<vmem>>, vector<1x8x32xf32>
      %113 = vector.shape_cast %112 : vector<1x8x32xf32> to vector<8x32xf32>
      %114 = vector.shape_cast %110 : vector<8x32xf32> to vector<1x8x32xf32>
      tpu.vector_store %arg12[%111, %c0_43, %c0_44], %114 {strides = array<i32>} : memref<4x8x32xf32, #tpu.memory_space<vmem>>, vector<1x8x32xf32>,
      %c3_i32 = arith.constant 3 : i32
      %c8_i32_45 = arith.constant 8 : i32
      %115 = arith.muli %c3_i32, %c8_i32_45 : i32
      %116 = tpu.assume_multiple %115, 8 : i32
      %117 = arith.index_cast %116 : i32 to index
      %c0_46 = arith.constant 0 : index
      %118 = vector.load %arg11[%117, %c0_46] : memref<32x128xf32, #tpu.memory_space<vmem>>, vector<8x128xf32>
      %cst_47 = arith.constant dense<0.000000e+00> : vector<8x128xf32>
      %119 = tpu.matmul %110, %12, %cst_47 {dimension_numbers = #tpu.dot_dimension_numbers<[1], [0], [0], [1], [0, 0, 1, 1], [], []>} : vector<8x32xf32>, vector<32x128xf32>, vector<8x128xf32> -> vector<8x128xf32>
      %120 = arith.addf %118, %119 : vector<8x128xf32>
      %121 = vector.extract_strided_slice %120 {offsets = [0, 0], sizes = [8, 96], strides = [1, 1]} : vector<8x128xf32> to vector<8x96xf32>
      %122 = arith.negf %121 : vector<8x96xf32>
      %123 = math.exp %122 : vector<8x96xf32>
      %cst_48 = arith.constant 1.000000e+00 : f32
      %124 = vector.broadcast %cst_48 : f32 to vector<8x96xf32>
      %125 = arith.addf %124, %123 : vector<8x96xf32>
      %126 = arith.divf %124, %125 : vector<8x96xf32>
      %127 = vector.extract_strided_slice %126 {offsets = [0, 0], sizes = [8, 32], strides = [1, 1]} : vector<8x96xf32> to vector<8x32xf32>
      %128 = vector.extract_strided_slice %126 {offsets = [0, 32], sizes = [8, 32], strides = [1, 1]} : vector<8x96xf32> to vector<8x32xf32>
      %129 = vector.extract_strided_slice %126 {offsets = [0, 64], sizes = [8, 32], strides = [1, 1]} : vector<8x96xf32> to vector<8x32xf32>
      %130 = vector.extract_strided_slice %120 {offsets = [0, 96], sizes = [8, 32], strides = [1, 1]} : vector<8x128xf32> to vector<8x32xf32>
      %131 = math.tanh %130 : vector<8x32xf32>
      %132 = arith.mulf %128, %109 : vector<8x32xf32>
      %133 = arith.mulf %127, %131 : vector<8x32xf32>
      %134 = arith.addf %132, %133 : vector<8x32xf32>
      %135 = math.tanh %134 : vector<8x32xf32>
      %136 = arith.mulf %129, %135 : vector<8x32xf32>
      %137 = arith.addi %15, %c3_i32 : i32
      %c9_i32_49 = arith.constant 9 : i32
      %138 = arith.cmpi slt, %137, %c9_i32_49 : i32
      %139 = arith.select %138, %134, %109 : vector<8x32xf32>
      %140 = arith.select %138, %136, %110 : vector<8x32xf32>
      %141 = arith.index_cast %c3_i32 : i32 to index
      %c0_50 = arith.constant 0 : index
      %c0_51 = arith.constant 0 : index
      %142 = vector.load %arg12[%141, %c0_50, %c0_51] : memref<4x8x32xf32, #tpu.memory_space<vmem>>, vector<1x8x32xf32>
      %143 = vector.shape_cast %142 : vector<1x8x32xf32> to vector<8x32xf32>
      %144 = vector.shape_cast %140 : vector<8x32xf32> to vector<1x8x32xf32>
      tpu.vector_store %arg12[%141, %c0_50, %c0_51], %144 {strides = array<i32>} : memref<4x8x32xf32, #tpu.memory_space<vmem>>, vector<1x8x32xf32>,
      %c4_i32_52 = arith.constant 4 : i32
      %c0_53 = arith.constant 0 : index
      %c0_54 = arith.constant 0 : index
      %145 = vector.load %arg13[%c0_53, %c0_54] : memref<8x32xf32, #tpu.memory_space<vmem>>, vector<8x32xf32>
      tpu.vector_store %arg13[%c0_53, %c0_54], %140 {strides = array<i32>} : memref<8x32xf32, #tpu.memory_space<vmem>>, vector<8x32xf32>,
      %c0_55 = arith.constant 0 : index
      %c0_56 = arith.constant 0 : index
      %146 = vector.load %arg14[%c0_55, %c0_56] : memref<8x32xf32, #tpu.memory_space<vmem>>, vector<8x32xf32>
      tpu.vector_store %arg14[%c0_55, %c0_56], %139 {strides = array<i32>} : memref<8x32xf32, #tpu.memory_space<vmem>>, vector<8x32xf32>,
      %c0_57 = arith.constant 0 : index
      %c0_58 = arith.constant 0 : index
      %147 = vector.load %arg9[%c0_57, %c0_58] : memref<8x32xf32, #tpu.memory_space<vmem>>, vector<8x32xf32>
      tpu.vector_store %arg9[%c0_57, %c0_58], %140 {strides = array<i32>} : memref<8x32xf32, #tpu.memory_space<vmem>>, vector<8x32xf32>,
      %c0_59 = arith.constant 0 : index
      %c0_60 = arith.constant 0 : index
      %148 = vector.load %arg10[%c0_59, %c0_60] : memref<8x32xf32, #tpu.memory_space<vmem>>, vector<8x32xf32>
      tpu.vector_store %arg10[%c0_59, %c0_60], %139 {strides = array<i32>} : memref<8x32xf32, #tpu.memory_space<vmem>>, vector<8x32xf32>,
    } else {
    }
    %c0_18 = arith.constant 0 : index
    %c0_19 = arith.constant 0 : index
    %c0_20 = arith.constant 0 : index
    %22 = vector.load %arg12[%c0_18, %c0_19, %c0_20] : memref<4x8x32xf32, #tpu.memory_space<vmem>>, vector<4x8x32xf32>
    %23 = arith.truncf %22 : vector<4x8x32xf32> to vector<4x8x32xbf16>
    %c0_21 = arith.constant 0 : index
    %c0_22 = arith.constant 0 : index
    %c0_23 = arith.constant 0 : index
    %24 = vector.load %arg8[%c0_21, %c0_22, %c0_23] : memref<4x8x32xbf16, #tpu.memory_space<vmem>>, vector<4x8x32xbf16>
    tpu.vector_store %arg8[%c0_21, %c0_22, %c0_23], %23 {strides = array<i32>} : memref<4x8x32xbf16, #tpu.memory_space<vmem>>, vector<4x8x32xbf16>,
    return
  }
  func.func @transform_0(%arg0: i32, %arg1: i32) -> (i32, i32, i32) {
    %c0_i32 = arith.constant 0 : i32
    %c0_i32_0 = arith.constant 0 : i32
    return %arg1, %arg0, %c0_i32 : i32, i32, i32
  }
  func.func @transform_1(%arg0: i32, %arg1: i32) -> (i32, i32) {
    %c0_i32 = arith.constant 0 : i32
    %c0_i32_0 = arith.constant 0 : i32
    %c0_i32_1 = arith.constant 0 : i32
    return %c0_i32, %c0_i32_0 : i32, i32
  }
  func.func @transform_2(%arg0: i32, %arg1: i32) -> (i32, i32) {
    %c0_i32 = arith.constant 0 : i32
    %c0_i32_0 = arith.constant 0 : i32
    %c0_i32_1 = arith.constant 0 : i32
    return %c0_i32, %c0_i32_0 : i32, i32
  }
  func.func @transform_3(%arg0: i32, %arg1: i32) -> (i32, i32) {
    %c0_i32 = arith.constant 0 : i32
    %c0_i32_0 = arith.constant 0 : i32
    %c0_i32_1 = arith.constant 0 : i32
    return %c0_i32, %c0_i32_0 : i32, i32
  }
  func.func @transform_4(%arg0: i32, %arg1: i32) -> (i32, i32) {
    %c0_i32 = arith.constant 0 : i32
    %c0_i32_0 = arith.constant 0 : i32
    return %arg0, %c0_i32 : i32, i32
  }
  func.func @transform_5(%arg0: i32, %arg1: i32) -> (i32, i32) {
    %c0_i32 = arith.constant 0 : i32
    %c0_i32_0 = arith.constant 0 : i32
    return %arg0, %c0_i32 : i32, i32
  }
  func.func @transform_6(%arg0: i32, %arg1: i32) -> (i32, i32, i32) {
    %c0_i32 = arith.constant 0 : i32
    %c0_i32_0 = arith.constant 0 : i32
    return %arg1, %arg0, %c0_i32 : i32, i32, i32
  }
  func.func @transform_7(%arg0: i32, %arg1: i32) -> (i32, i32) {
    %c0_i32 = arith.constant 0 : i32
    %c0_i32_0 = arith.constant 0 : i32
    return %arg0, %c0_i32 : i32, i32
  }
  func.func @transform_8(%arg0: i32, %arg1: i32) -> (i32, i32) {
    %c0_i32 = arith.constant 0 : i32
    %c0_i32_0 = arith.constant 0 : i32
    return %arg0, %c0_i32 : i32, i32
  }
}

</mosaic_0001>

<bundles_post_ra>
// kernel: char_decoder_forward.1
= control target key start
LH: loop header
LB: loop body
LE: loop exit
PB: predicated region body
PF: predicated region fallthrough
CT: control target
= control target key end

     0   :  { %s2077_s27 = smov 0   ;;  %s2079_s28 = smov 0   ;;  %s2295_s0 = inlined_call_operand.vmem [shape: bf16[12,8,64], index: 0, kind: input, shape index: {}]   ;;  %s2296_s1 = inlined_call_operand.vmem [shape: f32[64,128], index: 1, kind: input, shape index: {}]   ;;  %s2297_s2 = inlined_call_operand.vmem [shape: f32[32,128], index: 2, kind: input, shape index: {}]   ;;  %s2298_s3 = inlined_call_operand.vmem [shape: f32[1,128], index: 3, kind: input, shape index: {}]   ;;  %s2299_s4 = inlined_call_operand.vmem [shape: f32[8,32], index: 4, kind: input, shape index: {}]   ;;  %s2300_s5 = inlined_call_operand.vmem [shape: f32[8,32], index: 5, kind: input, shape index: {}]   ;;  %s2301_s6 = inlined_call_operand.vmem [shape: bf16[12,8,32], index: 6, kind: output, shape index: {0}]   ;;  %s2302_s7 = inlined_call_operand.vmem [shape: f32[8,32], index: 7, kind: output, shape index: {1}]   ;;  %s2303_s8 = inlined_call_operand.vmem [shape: f32[8,32], index: 8, kind: output, shape index: {2}]  }
   0x1   :  { %s2081_s29 = smov 0  }
   0x2 LB: > { %s28_s30 = sadd.s32 1, %s2014_s28  ;;  %p1619_p0 = scmp.ge.s32.totalorder %s2018_s29, 1  ;;  %s2018_s29 = sphi %s2081_s29, %s19_s29   ;;  %s2014_s28 = sphi %s2079_s28, %s2307_s28   ;;  %s2010_s27 = sphi %s2077_s27, %s2306_s27  }
   0x3   : > { %p29_p1 = scmp.ge.s32.totalorder %s28_s30, 3  ;;  %p305_p2 = scmp.lt.s32.totalorder %s2018_s29, 4 }
   0x5   : > { %s2309_s30 = smov (%p29_p1, %s28_s30), 0  ;;  %p306_p3 = pnand %p1619_p0, %p305_p2 }
   0x6   : > { %v403_v0 = vld [vmem:[%s2296_s1] sm:$0xff] (!%p306_p3)  ;;  %v404_v1 = vld [vmem:[%s2296_s1 + $0x8] sm:$0xff] (!%p306_p3)  ;;  %v405_v2 = vld [vmem:[%s2296_s1 + $0x10] sm:$0xff] (!%p306_p3)  ;;  %s2107_s15 = sshll.u32 (!%p306_p3), %s2010_s27, 2  ;;  %vm418_vm0 = vcmask (!%p306_p3), 523264   ;;  %p1629_p5 = scmp.ne.s32.totalorder (!%p306_p3), %s2010_s27, 0 }
   0x7   : > { %309 = sbr.rel (%p306_p3) target bundleno = 5893 (0x1705), region = 44  ;;  %v1824_v3 = vpack.c.bf16 (!%p306_p3), %v404_v1, %v403_v0  ;;  %v406_v4 = vld [vmem:[%s2296_s1 + $0x18] sm:$0xff] (!%p306_p3)  ;;  %p362_p4 = scmp.lt.s32.totalorder (!%p306_p3), %s2107_s15, 11  ;;  %v407_v6 = vld [vmem:[%s2296_s1 + $0x20] sm:$0xff] (!%p306_p3)  ;;  %v408_v7 = vld [vmem:[%s2296_s1 + $0x28] sm:$0xff] (!%p306_p3) }
   0x8   : > { %v1828_v5 = vpack.c.bf16 (!%p306_p3), %v406_v4, %v405_v2  ;;  %v1832_v8 = vpack.c.bf16 (!%p306_p3), %v408_v7, %v407_v6  ;;  %v409_v9 = vld [vmem:[%s2296_s1 + $0x30] sm:$0xff] (!%p306_p3)  ;;  %v410_v10 = vld [vmem:[%s2296_s1 + $0x38] sm:$0xff] (!%p306_p3)  ;;  %v1624_v18 = vld [vmem:[%s2298_s3] ss:$0 sm:$0xff] (!%p306_p3) }
   0x9   : > { %1825 = vmatprep.subr.bf16.mxu0 (!%p306_p3), %v1824_v3  ;;  %1888 = vmatprep.subr.bf16.mxu1 (!%p306_p3), %v1824_v3  ;;  %v1836_v15 = vpack.c.bf16 (!%p306_p3), %v410_v10, %v409_v9 }
   0xa   : > { %1827 = vmatpush3.bf16.msra.mxu0 (!%p306_p3), %v1824_v3  ;;  %1892 = vmatpush3.bf16.msra.mxu1 (!%p306_p3), %v1824_v3 }
   0xb   : > { %1829 = vmatprep.subr.bf16.mxu0 (!%p306_p3), %v1828_v5  ;;  %1889 = vmatprep.subr.bf16.mxu1 (!%p306_p3), %v1828_v5 }
   0xe   : > { %s363_s22 = scalar_select %p362_p4, %s2107_s15, 11  ;;  %1831 = vmatpush3.bf16.msra.mxu0 %v1828_v5  ;;  %1893 = vmatpush3.bf16.msra.mxu1 %v1828_v5 }
   0xf   : > { %1833 = vmatprep.subr.bf16.mxu0 %v1832_v8  ;;  %1890 = vmatprep.subr.bf16.mxu1 %v1832_v8  ;;  %v524_v27 = vld [vmem:[%s2299_s4] sm:$0xff] (!%p1629_p5)  ;;  %vm525_vm1 = vcmask (!%p1629_p5), 261120  }
  0x10   : > { %s1621_s23 = sshll.u32 %s363_s22, 2  ;;  %v527_v28 = vld [vmem:[%s2300_s5] sm:$0xff] (!%p1629_p5)  ;;  %526 = vst.msk [vmem:[#allocation4] sm:$0xff] (!%p1629_p5), %vm525_vm1, %v524_v27 }
  0x11   : > { %s368_s12 = scalar_lea.vmem %s2295_s0, %s1621_s23  ;;  %s2132_s16 = scalar_lea.vmem %s2301_s6, %s1621_s23  ;;  %528 = vst.msk [vmem:[#allocation5] sm:$0xff] (!%p1629_p5), %vm525_vm1, %v527_v28 }
  0x12   : > { %v1654_v11 = vld [vmem:[%s368_s12] sm:$0xff]   ;;  %v1661_v12 = vld [vmem:[%s368_s12 + $0x8] sm:$0xff]   ;;  %1835 = vmatpush3.bf16.msra.mxu0 %v1832_v8  ;;  %1894 = vmatpush3.bf16.msra.mxu1 %v1832_v8 }
  0x13   : > { %v1655_v13 = vunpack.c.l.bf16 %v1654_v11  ;;  %v1659_v14 = vunpack.c.l.bf16 %v1661_v12  ;;  %1837 = vmatprep.subr.bf16.mxu0 %v1836_v15  ;;  %1891 = vmatprep.subr.bf16.mxu1 %v1836_v15  ;;  %v1656_v16 = vunpack.c.h.bf16 %v1654_v11  ;;  %v1660_v17 = vunpack.c.h.bf16 %v1661_v12 }
  0x15   : > { %1730 = vmatprep.mubr.msk.f32.mxu0 %vm418_vm0, %v1655_v13  ;;  %1733 = vmatprep.mubr.msk.f32.mxu1 %vm418_vm0, %v1659_v14 }
  0x16   : > { %1839 = vmatpush3.bf16.msra.mxu0 %v1836_v15  ;;  %1895 = vmatpush3.bf16.msra.mxu1 %v1836_v15 }
  0x19   : > { %1731 = vmatmul.mubr.msk.f32.vlgmr.msra.gmra.mrb[0].mxu0 %vm418_vm0, %v1656_v16  ;;  %1734 = vmatmul.mubr.msk.f32.vlgmr.msra.gmra.mrb[0].mxu1 %vm418_vm0, %v1660_v17 }
  0xea   : > { %523 = sbr.rel (%p1629_p5) target bundleno = 241 (0xf1), region = 48 }
  0xec   : > { %v1732_v19 = vpop.f32.mrb[0].mxu0  ;;  %v1735_v20 = vpop.f32.mrb[0].mxu1 }
  0xed   : > { %v503_v21 = vadd.f32 %v1732_v19, %v1624_v18  ;;  %v513_v22 = vadd.f32 %v1735_v20, %v1624_v18  ;;  %v497_v23 = vpop.f32.mrb[1].mxu0  ;;  %v507_v24 = vpop.f32.mrb[1].mxu1 }
  0xee   : > { %v498_v25 = vadd.f32 %v1624_v18, %v497_v23  ;;  %v508_v26 = vadd.f32 %v1624_v18, %v507_v24 }
  0xef   : > { %517 = vst [vmem:[#allocation2 + $0x8] sm:$0xff] %v503_v21  ;;  %519 = vst [vmem:[#allocation2 + $0x18] sm:$0xff] %v513_v22 }
  0xf0   : > { %516 = vst [vmem:[#allocation2] sm:$0xff] %v498_v25  ;;  %518 = vst [vmem:[#allocation2 + $0x10] sm:$0xff] %v508_v26 }
  0xf1 PF: > { %v2151_v29 = vld [vmem:[%s2297_s2] sm:$0xff]  ;;  %v2156_v30 = vld [vmem:[%s2297_s2 + $0x8] sm:$0xff]  ;;  %v2161_v31 = vld [vmem:[%s2297_s2 + $0x10] sm:$0xff]  ;;  %p1631_p6 = scmp.eq.s32.totalorder %s2010_s27, 2 }
  0xf2   : > { %v2166_v32 = vld [vmem:[%s2297_s2 + $0x18] sm:$0xff]  ;;  %v2168_v33 = vld [vmem:[#allocation4] sm:$0xff]  ;;  %v2170_v34 = vld [vmem:[#allocation5] sm:$0xff]  ;;  %v1841_v35 = vpack.c.bf16 (!%p1631_p6), %v2156_v30, %v2151_v29  ;;  %v2020_v36 = vmov (!%p1631_p6), 0.0|0.0   ;;  %vm2021_vm2 = vmmov (!%p1631_p6), 0   ;;  %v2022_v38 = vmov (!%p1631_p6), 0.0  }
  0xf3   : > { %539 = sbr.rel (%p1631_p6) target bundleno = 3060 (0xbf4), region = 52  ;;  %1840 = vmatprep.subr.bf16.mxu0 (!%p1631_p6), %v2020_v36  ;;  %1846 = vmatprep.subr.bf16.mxu1 (!%p1631_p6), %v2020_v36  ;;  %v1844_v37 = vpack.c.bf16 (!%p1631_p6), %v2166_v32, %v2161_v31  ;;  %vm541_vm3 = vcmask (!%p1631_p6), 261120   ;;  %s2023_s13 = smov (!%p1631_p6), 32  }
  0xf4   : > { %1842 = vmatpush3.bf16.msra.mxu0 (!%p1631_p6), %v1841_v35  ;;  %1744 = vmatprep.mubr.msk.f32.mxu0 (!%p1631_p6), %vm2021_vm2, %v2022_v38  ;;  %s2024_s14 = smov (!%p1631_p6), 64   ;;  %s2025_s17 = smov (!%p1631_p6), 96  }
  0xf5   : > { %1843 = vmatprep.subr.bf16.mxu0 (!%p1631_p6), %v2020_v36  ;;  %1848 = vmatpush3.bf16.msra.mxu1 (!%p1631_p6), %v1841_v35 }
  0xf6   : > { %1849 = vmatprep.subr.bf16.mxu1 (!%p1631_p6), %v2020_v36  ;;  %1755 = vmatprep.mubr.msk.f32.mxu1 (!%p1631_p6), %vm2021_vm2, %v2022_v38  ;;  %v650_v58 = vld [vmem:[#allocation2 + $0x8] sm:$0xff] (!%p1631_p6) }
  0xf7   : > { %v540_v39 = vld [vmem:[#allocation2] sm:$0xff] (!%p1631_p6)  ;;  %v755_v12 = vld [vmem:[#allocation2 + $0x10] sm:$0xff] (!%p1631_p6) }
  0xf8   : > { %1845 = vmatpush3.bf16.msra.mxu0 (!%p1631_p6), %v1844_v37 }
  0xf9   : > { %1851 = vmatpush3.bf16.msra.mxu1 (!%p1631_p6), %v1844_v37  ;;  %1852 = vmatprep.subr.bf16.mxu0 (!%p1631_p6), %v2020_v36 }
  0xfa   : > { %1858 = vmatprep.subr.bf16.mxu1 %v2020_v36 }
  0xfb   : > { %1745 = vmatmul.mubr.msk.f32.vlgmr.msra.gmra.mrb[0].mxu0 %vm541_vm3, %v2168_v33 }
  0xfc   : > { %1854 = vmatpush3.bf16.msra.mxu0 %v1841_v35  ;;  %1766 = vmatprep.mubr.msk.f32.mxu0 %vm2021_vm2, %v2022_v38 }
  0xfd   : > { %1855 = vmatprep.subr.bf16.mxu0 %v2020_v36 }
 0x100   : > { %1857 = vmatpush3.bf16.msra.mxu0 %v1844_v37 }
 0x1ce   : > { %v611_v40 = vpop.f32.mrb[0].mxu0 }
 0x1cf   : > { %v615_v41 = vadd.f32 %v611_v40, %v540_v39  ;;  %v1746_v42 = vpop.f32.mrb[1].mxu0 }
 0x1d1   : > { %1932 = vtanh.f32 %v615_v41  ;;  %v1633_v44 = vmul.f32 -1.442695, %v615_v41 }
 0x1d3   : > { %1934 = vpow2.f32 %v1633_v44 }
 0x1db   : > { %v1933_v43 = vpop.eup %1932 }
 0x1dc   : > { %629 = vrot.lane.b32.xlu0 %v1933_v43, %s2023_s13 }
 0x1dd   : > { %v1935_v45 = vpop.eup %1934 }
 0x1de   : > { %v619_v46 = vadd.f32 1.0, %v1935_v45 }
 0x1e0   : > { %624 = vrot.lane.b32.xlu0 %v2170_v34, %s2023_s13  ;;  %1936 = vrcp.f32 %v619_v46 }
 0x1ea   : > { %v1937_v47 = vpop.eup %1936 }
 0x24e   : > { %v630_v48 = vpop.permute.xlu0 %629 }
 0x24f   : > { %v632_v49 = vmul.f32 %v1937_v47, %v630_v48 }
 0x251   : > { %634 = vrot.lane.b32.xlu1 %v632_v49, %s2023_s13 }
 0x252   : > { %v625_v50 = vpop.permute.xlu0 %624 }
 0x253   : > { %v627_v51 = vmul.f32 %v1937_v47, %v625_v50 }
 0x2c3   : > { %v635_v52 = vpop.permute.xlu1 %634 }
 0x2c4   : > { %v637_v53 = vadd.f32 %v635_v52, %v627_v51 }
 0x2c6   : > { %1938 = vtanh.f32 %v637_v53 }
 0x2d0   : > { %v1939_v54 = vpop.eup %1938 }
 0x2d1   : > { %640 = vrot.lane.b32.xlu1 %v1939_v54, %s2023_s13 }
 0x343   : > { %v641_v55 = vpop.permute.xlu1 %640 }
 0x344   : > { %v643_v56 = vmul.f32 %v1937_v47, %v641_v55 }
 0x346   : > { %645 = vrot.lane.b32.xlu0 %v643_v56, %s2024_s14 }
 0x3b8   : > { %v646_v57 = vpop.permute.xlu0 %645 }
 0x3b9   : > { %648 = vst.msk [vmem:[#allocation3] sm:$0xff] %vm541_vm3, %v646_v57  ;;  %1756 = vmatmul.mubr.msk.f32.vlgmr.msra.gmra.mrb[0].mxu1 %vm541_vm3, %v646_v57 }
 0x3ba   : > { %1860 = vmatpush3.bf16.msra.mxu1 %v1841_v35  ;;  %1777 = vmatprep.mubr.msk.f32.mxu1 %vm2021_vm2, %v2022_v38 }
 0x3bb   : > { %1861 = vmatprep.subr.bf16.mxu1 %v2020_v36  ;;  %v860_v36 = vld [vmem:[#allocation2 + $0x18] sm:$0xff] }
 0x3be   : > { %1863 = vmatpush3.bf16.msra.mxu1 %v1844_v37 }
 0x48c   : > { %v719_v59 = vpop.f32.mrb[0].mxu1 }
 0x48d   : > { %v723_v60 = vadd.f32 %v719_v59, %v650_v58  ;;  %v1757_v61 = vpop.f32.mrb[1].mxu1 }
 0x48f   : > { %1940 = vtanh.f32 %v723_v60  ;;  %v1635_v63 = vmul.f32 -1.442695, %v723_v60 }
 0x491   : > { %1942 = vpow2.f32 %v1635_v63 }
 0x499   : > { %v1941_v62 = vpop.eup %1940 }
 0x49a   : > { %733 = vrot.lane.b32.xlu1 %v1941_v62, %s2023_s13 }
 0x49b   : > { %v1943_v0 = vpop.eup %1942 }
 0x49c   : > { %v727_v1 = vadd.f32 1.0, %v1943_v0 }
 0x49e   : > { %1944 = vrcp.f32 %v727_v1 }
 0x4a8   : > { %v1945_v2 = vpop.eup %1944 }
 0x4a9   : > { %v731_v5 = vmul.f32 %v1945_v2, %v637_v53 }
 0x50c   : > { %v734_v3 = vpop.permute.xlu1 %733 }
 0x50d   : > { %v736_v4 = vmul.f32 %v1945_v2, %v734_v3 }
 0x50f   : > { %738 = vrot.lane.b32.xlu0 %v736_v4, %s2023_s13 }
 0x581   : > { %v739_v6 = vpop.permute.xlu0 %738 }
 0x582   : > { %v741_v7 = vadd.f32 %v739_v6, %v731_v5 }
 0x584   : > { %1946 = vtanh.f32 %v741_v7 }
 0x58e   : > { %v1947_v8 = vpop.eup %1946 }
 0x58f   : > { %744 = vrot.lane.b32.xlu1 %v1947_v8, %s2023_s13 }
 0x601   : > { %v745_v9 = vpop.permute.xlu1 %744 }
 0x602   : > { %v747_v10 = vmul.f32 %v1945_v2, %v745_v9 }
 0x604   : > { %749 = vrot.lane.b32.xlu0 %v747_v10, %s2024_s14 }
 0x676   : > { %v750_v11 = vpop.permute.xlu0 %749 }
 0x677   : > { %753 = vst.msk [vmem:[#allocation3 + $0x8] sm:$0xff] %vm541_vm3, %v750_v11  ;;  %1767 = vmatmul.mubr.msk.f32.vlgmr.msra.gmra.mrb[2].mxu0 %vm541_vm3, %v750_v11 }
 0x74a   : > { %v824_v13 = vpop.f32.mrb[2].mxu0 }
 0x74b   : > { %v828_v14 = vadd.f32 %v824_v13, %v755_v12  ;;  %v1768_v15 = vpop.f32.mrb[3].mxu0 }
 0x74d   : > { %1948 = vtanh.f32 %v828_v14  ;;  %v1637_v17 = vmul.f32 -1.442695, %v828_v14 }
 0x74f   : > { %1950 = vpow2.f32 %v1637_v17 }
 0x757   : > { %v1949_v16 = vpop.eup %1948 }
 0x758   : > { %838 = vrot.lane.b32.xlu1 %v1949_v16, %s2023_s13 }
 0x759   : > { %v1951_v18 = vpop.eup %1950 }
 0x75a   : > { %v832_v19 = vadd.f32 1.0, %v1951_v18 }
 0x75c   : > { %1952 = vrcp.f32 %v832_v19 }
 0x766   : > { %v1953_v20 = vpop.eup %1952 }
 0x767   : > { %v836_v23 = vmul.f32 %v1953_v20, %v741_v7 }
 0x7ca   : > { %v839_v21 = vpop.permute.xlu1 %838 }
 0x7cb   : > { %v841_v22 = vmul.f32 %v1953_v20, %v839_v21 }
 0x7cd   : > { %843 = vrot.lane.b32.xlu0 %v841_v22, %s2023_s13 }
 0x83f   : > { %v844_v24 = vpop.permute.xlu0 %843 }
 0x840   : > { %v846_v25 = vadd.f32 %v844_v24, %v836_v23 }
 0x842   : > { %1954 = vtanh.f32 %v846_v25 }
 0x84c   : > { %v1955_v26 = vpop.eup %1954 }
 0x84d   : > { %849 = vrot.lane.b32.xlu1 %v1955_v26, %s2023_s13 }
 0x8bf   : > { %v850_v27 = vpop.permute.xlu1 %849 }
 0x8c0   : > { %v852_v28 = vmul.f32 %v1953_v20, %v850_v27 }
 0x8c2   : > { %854 = vrot.lane.b32.xlu0 %v852_v28, %s2024_s14 }
 0x934   : > { %v855_v35 = vpop.permute.xlu0 %854 }
 0x935   : > { %858 = vst.msk [vmem:[#allocation3 + $0x10] sm:$0xff] %vm541_vm3, %v855_v35  ;;  %1778 = vmatmul.mubr.msk.f32.vlgmr.msra.gmra.mrb[2].mxu1 %vm541_vm3, %v855_v35 }
 0xa08   : > { %v929_v37 = vpop.f32.mrb[2].mxu1 }
 0xa09   : > { %v933_v38 = vadd.f32 %v929_v37, %v860_v36  ;;  %v1779_v39 = vpop.f32.mrb[3].mxu1 }
 0xa0b   : > { %1956 = vtanh.f32 %v933_v38  ;;  %v1639_v41 = vmul.f32 -1.442695, %v933_v38 }
 0xa0d   : > { %1958 = vpow2.f32 %v1639_v41 }
 0xa15   : > { %v1957_v40 = vpop.eup %1956 }
 0xa16   : > { %943 = vrot.lane.b32.xlu1 %v1957_v40, %s2023_s13 }
 0xa17   : > { %v1959_v42 = vpop.eup %1958 }
 0xa18   : > { %v937_v43 = vadd.f32 1.0, %v1959_v42 }
 0xa1a   : > { %1960 = vrcp.f32 %v937_v43 }
 0xa24   : > { %v1961_v44 = vpop.eup %1960 }
 0xa25   : > { %v941_v47 = vmul.f32 %v1961_v44, %v846_v25 }
 0xa88   : > { %v944_v45 = vpop.permute.xlu1 %943 }
 0xa89   : > { %v946_v46 = vmul.f32 %v1961_v44, %v944_v45 }
 0xa8b   : > { %948 = vrot.lane.b32.xlu0 %v946_v46, %s2023_s13 }
 0xafd   : > { %v949_v48 = vpop.permute.xlu0 %948 }
 0xafe   : > { %v951_v49 = vadd.f32 %v949_v48, %v941_v47 }
 0xb00   : > { %1962 = vtanh.f32 %v951_v49 }
 0xb0a   : > { %v1963_v50 = vpop.eup %1962 }
 0xb0b   : > { %954 = vrot.lane.b32.xlu1 %v1963_v50, %s2023_s13 }
 0xb0f   : > { %966 = vrot.lane.b32.xlu1 %v951_v49, %s2025_s17 }
 0xb7d   : > { %v955_v51 = vpop.permute.xlu1 %954 }
 0xb7e   : > { %v957_v52 = vmul.f32 %v1961_v44, %v955_v51 }
 0xb80   : > { %959 = vrot.lane.b32.xlu0 %v957_v52, %s2024_s14 }
 0xb81   : > { %v967_v53 = vpop.permute.xlu1 %966 }
 0xb82   : > { %969 = vst.msk [vmem:[#allocation5] sm:$0xff] %vm541_vm3, %v967_v53 }
 0xbf2   : > { %v960_v54 = vpop.permute.xlu0 %959 }
 0xbf3   : > { %963 = vst.msk [vmem:[#allocation3 + $0x18] sm:$0xff] %vm541_vm3, %v960_v54  ;;  %964 = vst.msk [vmem:[#allocation4] sm:$0xff] %vm541_vm3, %v960_v54 }
 0xbf4 PF: > { %p1640_p7 = scmp.ne.s32.totalorder %s2010_s27, 2 }
 0xbf5   : > { %v1865_v55 = vpack.c.bf16 (!%p1640_p7), %v2156_v30, %v2151_v29  ;;  %v2026_v56 = vmov (!%p1640_p7), 0.0|0.0   ;;  %v1868_v57 = vpack.c.bf16 (!%p1640_p7), %v2166_v32, %v2161_v31  ;;  %vm2027_vm4 = vmmov (!%p1640_p7), 0   ;;  %v974_v29 = vld [vmem:[#allocation2] sm:$0xff] (!%p1640_p7)  ;;  %s2029_s27 = smov (!%p1640_p7), 32   ;;  %s2030_s18 = smov (!%p1640_p7), 64   ;;  %v1093_v12 = vld [vmem:[#allocation2 + $0x8] sm:$0xff] (!%p1640_p7) }
 0xbf6   : > { %973 = sbr.rel (%p1640_p7) target bundleno = 5884 (0x16fc), region = 56  ;;  %1864 = vmatprep.subr.bf16.mxu0 (!%p1640_p7), %v2026_v56  ;;  %1870 = vmatprep.subr.bf16.mxu1 (!%p1640_p7), %v2026_v56  ;;  %v2028_v58 = vmov (!%p1640_p7), 0.0   ;;  %vm975_vm5 = vcmask (!%p1640_p7), 261120   ;;  %p1078_p8 = scmp.lt.s32.totalorder (!%p1640_p7), %s2107_s15, 9  ;;  %v1205_v39 = vld [vmem:[#allocation2 + $0x10] sm:$0xff] (!%p1640_p7) }
 0xbf7   : > { %1866 = vmatpush3.bf16.msra.mxu0 (!%p1640_p7), %v1865_v55  ;;  %1788 = vmatprep.mubr.msk.f32.mxu0 (!%p1640_p7), %vm2027_vm4, %v2028_v58  ;;  %s1191_s20 = sadd.s32 (!%p1640_p7), 1, %s2107_s15  ;;  %s1303_s22 = sadd.s32 (!%p1640_p7), 2, %s2107_s15 }
 0xbf8   : > { %1867 = vmatprep.subr.bf16.mxu0 (!%p1640_p7), %v2026_v56  ;;  %1872 = vmatpush3.bf16.msra.mxu1 (!%p1640_p7), %v1865_v55  ;;  %p1192_p9 = scmp.lt.s32.totalorder (!%p1640_p7), %s1191_s20, 9  ;;  %p1304_p10 = scmp.lt.s32.totalorder (!%p1640_p7), %s1303_s22, 9 }
 0xbf9   : > { %1873 = vmatprep.subr.bf16.mxu1 (!%p1640_p7), %v2026_v56  ;;  %1799 = vmatprep.mubr.msk.f32.mxu1 (!%p1640_p7), %vm2027_vm4, %v2028_v58  ;;  %s1415_s24 = sadd.s32 (!%p1640_p7), 3, %s2107_s15  ;;  %s2031_s26 = smov (!%p1640_p7), 96  }
 0xbfa   : > { %p1416_p11 = scmp.lt.s32.totalorder (!%p1640_p7), %s1415_s24, 9 }
 0xbfb   : > { %1869 = vmatpush3.bf16.msra.mxu0 (!%p1640_p7), %v1868_v57 }
 0xbfc   : > { %1875 = vmatpush3.bf16.msra.mxu1 (!%p1640_p7), %v1868_v57  ;;  %1876 = vmatprep.subr.bf16.mxu0 (!%p1640_p7), %v2026_v56 }
 0xbfd   : > { %1882 = vmatprep.subr.bf16.mxu1 %v2026_v56  ;;  %s1079_s19 = scalar_select %p1078_p8, 1, 0 }
 0xbfe   : > { %1789 = vmatmul.mubr.msk.f32.vlgmr.msra.gmra.mrb[0].mxu0 %vm975_vm5, %v2168_v33  ;;  %s1193_s21 = scalar_select %p1192_p9, 1, 0 }
 0xbff   : > { %1878 = vmatpush3.bf16.msra.mxu0 %v1865_v55  ;;  %1810 = vmatprep.mubr.msk.f32.mxu0 %vm2027_vm4, %v2028_v58  ;;  %v1080_v6 = vstv %s1079_s19  ;;  %s1305_s23 = scalar_select %p1304_p10, 1, 0 }
 0xc00   : > { %1879 = vmatprep.subr.bf16.mxu0 %v2026_v56  ;;  %vm2235_vm6 = vcmp.eq.s32.totalorder %v1080_v6, 1  ;;  %v1194_v28 = vstv %s1193_s21  ;;  %s1417_s25 = scalar_select %p1416_p11, 1, 0 }
 0xc01   : > { %vm1195_vm7 = vcmp.eq.s32.totalorder %v1194_v28, 1 }
 0xc02   : > { %v1418_v6 = vstv %s1417_s25 }
 0xc03   : > { %1881 = vmatpush3.bf16.msra.mxu0 %v1868_v57  ;;  %vm1419_vm9 = vcmp.eq.s32.totalorder %v1418_v6, 1 }
 0xcd1   : > { %v1045_v30 = vpop.f32.mrb[0].mxu0 }
 0xcd2   : > { %v1049_v31 = vadd.f32 %v1045_v30, %v974_v29  ;;  %v1790_v32 = vpop.f32.mrb[1].mxu0  ;;  %v1317_v30 = vld [vmem:[#allocation2 + $0x18] sm:$0xff] }
 0xcd4   : > { %1964 = vtanh.f32 %v1049_v31  ;;  %v1642_v60 = vmul.f32 -1.442695, %v1049_v31 }
 0xcd6   : > { %1966 = vpow2.f32 %v1642_v60 }
 0xcde   : > { %v1965_v59 = vpop.eup %1964 }
 0xcdf   : > { %1063 = vrot.lane.b32.xlu0 %v1965_v59, %s2029_s27 }
 0xce0   : > { %v1967_v61 = vpop.eup %1966 }
 0xce1   : > { %v1053_v62 = vadd.f32 1.0, %v1967_v61 }
 0xce3   : > { %1058 = vrot.lane.b32.xlu0 %v2170_v34, %s2029_s27  ;;  %1968 = vrcp.f32 %v1053_v62 }
 0xce7   : > { %1083 = vrot.lane.b32.xlu0 %v2168_v33, %s2030_s18 }
 0xced   : > { %v1969_v63 = vpop.eup %1968 }
 0xd51   : > { %v1064_v0 = vpop.permute.xlu0 %1063 }
 0xd52   : > { %v1066_v1 = vmul.f32 %v1969_v63, %v1064_v0 }
 0xd54   : > { %1068 = vrot.lane.b32.xlu1 %v1066_v1, %s2029_s27 }
 0xd55   : > { %v1059_v2 = vpop.permute.xlu0 %1058 }
 0xd56   : > { %v1061_v3 = vmul.f32 %v1969_v63, %v1059_v2 }
 0xd59   : > { %v1084_v8 = vpop.permute.xlu0 %1083 }
 0xdc6   : > { %v1069_v4 = vpop.permute.xlu1 %1068 }
 0xdc7   : > { %v1071_v5 = vadd.f32 %v1069_v4, %v1061_v3 }
 0xdc9   : > { %1970 = vtanh.f32 %v1071_v5  ;;  %v1082_v23 = vsel %vm2235_vm6, %v1071_v5, %v1059_v2 }
 0xdd3   : > { %v1971_v34 = vpop.eup %1970 }
 0xdd4   : > { %1074 = vrot.lane.b32.xlu1 %v1971_v34, %s2029_s27 }
 0xe46   : > { %v1075_v7 = vpop.permute.xlu1 %1074 }
 0xe47   : > { %v1077_v9 = vmul.f32 %v1969_v63, %v1075_v7 }
 0xe49   : > { %v1086_v33 = vsel %vm2235_vm6, %v1077_v9, %v1084_v8 }
 0xe4a   : > { %1088 = vrot.lane.b32.xlu1 %v1086_v33, %s2030_s18 }
 0xebc   : > { %v1089_v11 = vpop.permute.xlu1 %1088 }
 0xebd   : > { %1091 = vst.msk [vmem:[#allocation3] sm:$0xff] %vm975_vm5, %v1089_v11  ;;  %1800 = vmatmul.mubr.msk.f32.vlgmr.msra.gmra.mrb[0].mxu1 %vm975_vm5, %v1089_v11 }
 0xebe   : > { %1884 = vmatpush3.bf16.msra.mxu1 %v1865_v55  ;;  %1821 = vmatprep.mubr.msk.f32.mxu1 %vm2027_vm4, %v2028_v58  ;;  %v1306_v55 = vstv %s1305_s23 }
 0xebf   : > { %1885 = vmatprep.subr.bf16.mxu1 %v2026_v56  ;;  %vm1307_vm8 = vcmp.eq.s32.totalorder %v1306_v55, 1 }
 0xec2   : > { %1887 = vmatpush3.bf16.msra.mxu1 %v1868_v57 }
 0xf90   : > { %v1162_v13 = vpop.f32.mrb[0].mxu1 }
 0xf91   : > { %v1166_v14 = vadd.f32 %v1162_v13, %v1093_v12  ;;  %v1801_v15 = vpop.f32.mrb[1].mxu1 }
 0xf93   : > { %1972 = vtanh.f32 %v1166_v14  ;;  %v1644_v17 = vmul.f32 -1.442695, %v1166_v14 }
 0xf95   : > { %1974 = vpow2.f32 %v1644_v17 }
 0xf9d   : > { %v1973_v16 = vpop.eup %1972 }
 0xf9e   : > { %1176 = vrot.lane.b32.xlu0 %v1973_v16, %s2029_s27 }
 0xf9f   : > { %v1975_v18 = vpop.eup %1974 }
 0xfa0   : > { %v1170_v19 = vadd.f32 1.0, %v1975_v18 }
 0xfa2   : > { %1976 = vrcp.f32 %v1170_v19 }
 0xfac   : > { %v1977_v20 = vpop.eup %1976 }
 0xfad   : > { %v1174_v24 = vmul.f32 %v1977_v20, %v1082_v23 }
0x1010   : > { %v1177_v21 = vpop.permute.xlu0 %1176 }
0x1011   : > { %v1179_v22 = vmul.f32 %v1977_v20, %v1177_v21 }
0x1013   : > { %1181 = vrot.lane.b32.xlu1 %v1179_v22, %s2029_s27 }
0x1085   : > { %v1182_v25 = vpop.permute.xlu1 %1181 }
0x1086   : > { %v1184_v26 = vadd.f32 %v1182_v25, %v1174_v24 }
0x1088   : > { %1978 = vtanh.f32 %v1184_v26  ;;  %v1196_v50 = vsel %vm1195_vm7, %v1184_v26, %v1082_v23 }
0x1092   : > { %v1979_v27 = vpop.eup %1978 }
0x1093   : > { %1187 = vrot.lane.b32.xlu0 %v1979_v27, %s2029_s27 }
0x1105   : > { %v1188_v35 = vpop.permute.xlu0 %1187 }
0x1106   : > { %v1190_v36 = vmul.f32 %v1977_v20, %v1188_v35 }
0x1108   : > { %v1197_v37 = vsel %vm1195_vm7, %v1190_v36, %v1086_v33 }
0x1109   : > { %1199 = vrot.lane.b32.xlu1 %v1197_v37, %s2030_s18 }
0x117b   : > { %v1200_v38 = vpop.permute.xlu1 %1199 }
0x117c   : > { %1203 = vst.msk [vmem:[#allocation3 + $0x8] sm:$0xff] %vm975_vm5, %v1200_v38  ;;  %1811 = vmatmul.mubr.msk.f32.vlgmr.msra.gmra.mrb[2].mxu0 %vm975_vm5, %v1200_v38 }
0x124f   : > { %v1274_v40 = vpop.f32.mrb[2].mxu0 }
0x1250   : > { %v1278_v41 = vadd.f32 %v1274_v40, %v1205_v39  ;;  %v1812_v42 = vpop.f32.mrb[3].mxu0 }
0x1252   : > { %1980 = vtanh.f32 %v1278_v41  ;;  %v1646_v44 = vmul.f32 -1.442695, %v1278_v41 }
0x1254   : > { %1982 = vpow2.f32 %v1646_v44 }
0x125c   : > { %v1981_v43 = vpop.eup %1980 }
0x125d   : > { %1288 = vrot.lane.b32.xlu0 %v1981_v43, %s2029_s27 }
0x125e   : > { %v1983_v45 = vpop.eup %1982 }
0x125f   : > { %v1282_v46 = vadd.f32 1.0, %v1983_v45 }
0x1261   : > { %1984 = vrcp.f32 %v1282_v46 }
0x126b   : > { %v1985_v47 = vpop.eup %1984 }
0x126c   : > { %v1286_v51 = vmul.f32 %v1985_v47, %v1196_v50 }
0x12cf   : > { %v1289_v48 = vpop.permute.xlu0 %1288 }
0x12d0   : > { %v1291_v49 = vmul.f32 %v1985_v47, %v1289_v48 }
0x12d2   : > { %1293 = vrot.lane.b32.xlu1 %v1291_v49, %s2029_s27 }
0x1344   : > { %v1294_v52 = vpop.permute.xlu1 %1293 }
0x1345   : > { %v1296_v53 = vadd.f32 %v1294_v52, %v1286_v51 }
0x1347   : > { %1986 = vtanh.f32 %v1296_v53  ;;  %v1308_v3 = vsel %vm1307_vm8, %v1296_v53, %v1196_v50 }
0x1351   : > { %v1987_v54 = vpop.eup %1986 }
0x1352   : > { %1299 = vrot.lane.b32.xlu0 %v1987_v54, %s2029_s27 }
0x13c4   : > { %v1300_v56 = vpop.permute.xlu0 %1299 }
0x13c5   : > { %v1302_v57 = vmul.f32 %v1985_v47, %v1300_v56 }
0x13c7   : > { %v1309_v58 = vsel %vm1307_vm8, %v1302_v57, %v1197_v37 }
0x13c8   : > { %1311 = vrot.lane.b32.xlu1 %v1309_v58, %s2030_s18 }
0x143a   : > { %v1312_v29 = vpop.permute.xlu1 %1311 }
0x143b   : > { %1315 = vst.msk [vmem:[#allocation3 + $0x10] sm:$0xff] %vm975_vm5, %v1312_v29  ;;  %1822 = vmatmul.mubr.msk.f32.vlgmr.msra.gmra.mrb[2].mxu1 %vm975_vm5, %v1312_v29 }
0x150e   : > { %v1386_v31 = vpop.f32.mrb[2].mxu1 }
0x150f   : > { %v1390_v32 = vadd.f32 %v1386_v31, %v1317_v30  ;;  %v1823_v59 = vpop.f32.mrb[3].mxu1 }
0x1511   : > { %1988 = vtanh.f32 %v1390_v32  ;;  %v1648_v61 = vmul.f32 -1.442695, %v1390_v32 }
0x1513   : > { %1990 = vpow2.f32 %v1648_v61 }
0x151b   : > { %v1989_v60 = vpop.eup %1988 }
0x151c   : > { %1400 = vrot.lane.b32.xlu0 %v1989_v60, %s2029_s27 }
0x151d   : > { %v1991_v62 = vpop.eup %1990 }
0x151e   : > { %v1394_v63 = vadd.f32 1.0, %v1991_v62 }
0x1520   : > { %1992 = vrcp.f32 %v1394_v63 }
0x152a   : > { %v1993_v0 = vpop.eup %1992 }
0x152b   : > { %v1398_v4 = vmul.f32 %v1993_v0, %v1308_v3 }
0x158e   : > { %v1401_v1 = vpop.permute.xlu0 %1400 }
0x158f   : > { %v1403_v2 = vmul.f32 %v1993_v0, %v1401_v1 }
0x1591   : > { %1405 = vrot.lane.b32.xlu1 %v1403_v2, %s2029_s27 }
0x1603   : > { %v1406_v5 = vpop.permute.xlu1 %1405 }
0x1604   : > { %v1408_v34 = vadd.f32 %v1406_v5, %v1398_v4 }
0x1606   : > { %1994 = vtanh.f32 %v1408_v34  ;;  %v1420_v8 = vsel %vm1419_vm9, %v1408_v34, %v1308_v3 }
0x1610   : > { %v1995_v7 = vpop.eup %1994 }
0x1611   : > { %1411 = vrot.lane.b32.xlu0 %v1995_v7, %s2029_s27 }
0x1615   : > { %1430 = vrot.lane.b32.xlu0 %v1420_v8, %s2031_s26 }
0x1683   : > { %v1412_v9 = vpop.permute.xlu0 %1411 }
0x1684   : > { %v1414_v10 = vmul.f32 %v1993_v0, %v1412_v9 }
0x1686   : > { %v1421_v33 = vsel %vm1419_vm9, %v1414_v10, %v1309_v58 }
0x1687   : > { %1423 = vrot.lane.b32.xlu1 %v1421_v33, %s2030_s18  ;;  %v1431_v11 = vpop.permute.xlu0 %1430 }
0x1688   : > { %1433 = vst.msk [vmem:[#allocation5] sm:$0xff] %vm975_vm5, %v1431_v11  ;;  %1435 = vst.msk [vmem:[%s2303_s8] sm:$0xff] %vm975_vm5, %v1431_v11 }
0x16f9   : > { %v1424_v12 = vpop.permute.xlu1 %1423 }
0x16fa   : > { %1427 = vst.msk [vmem:[#allocation3 + $0x18] sm:$0xff] %vm975_vm5, %v1424_v12  ;;  %1428 = vst.msk [vmem:[#allocation4] sm:$0xff] %vm975_vm5, %v1424_v12 }
0x16fb   : > { %1434 = vst.msk [vmem:[%s2302_s7] sm:$0xff] %vm975_vm5, %v1424_v12 }
0x16fc PF: > { %v1436_v13 = vld [vmem:[#allocation3] sm:$0xff]  ;;  %vm1444_vm10 = vcmask 257024   ;;  %v1437_v14 = vld [vmem:[#allocation3 + $0x8] sm:$0xff]  ;;  %v1438_v15 = vld [vmem:[#allocation3 + $0x10] sm:$0xff] }
0x16fd   : > { %v1440_v16 = vpack.c.bf16 %v1436_v13, %v1436_v13  ;;  %v1441_v17 = vpack.c.bf16 %v1437_v14, %v1437_v14  ;;  %v1442_v18 = vpack.c.bf16 %v1438_v15, %v1438_v15 }
0x16ff   : > { %1445 = vst.msk [vmem:[%s2132_s16] sm:$0xf] %vm1444_vm10, %v1440_v16  ;;  %1446 = vst.msk [vmem:[%s2132_s16 + $0x4] sm:$0xf] %vm1444_vm10, %v1441_v17 }
0x1700   : > { %1447 = vst.msk [vmem:[%s2132_s16 + $0x8] sm:$0xf] %vm1444_vm10, %v1442_v18 }
0x1701   : > { %v1439_v19 = vld [vmem:[#allocation3 + $0x18] sm:$0xff] }
0x1702   : > { %v1443_v20 = vpack.c.bf16 %v1439_v19, %v1439_v19 }
0x1704   : > { %1448 = vst.msk [vmem:[%s2132_s16 + $0xc] sm:$0xf] %vm1444_vm10, %v1443_v20 }
0x1705 PF: > { %s19_s29 = sadd.s32 1, %s2018_s29   ;;  %s2306_s27 = smov %s2014_s28 }
0x1706   : > { %p16_p12 = scmp.ge.s32.totalorder %s19_s29, 5   ;;  %s2307_s28 = smov %s2309_s30 }
0x1708   :  { %18 = sbr.rel (!%p16_p12) target bundleno = 2 (0x2), region = 128 }

</bundles_post_ra>
